<compile_context>
chip_gen: v7x
topology: tpu7x:2x2x1
jax: 0.10.0
libtpu: 0.0.40
codegen_flags: <defaults>
</compile_context>

<pallas_src>
import jax
import jax.numpy as jnp
from jax.experimental import pallas as pl
from jax.experimental.pallas import tpu as pltpu

IN_FEATURES = 5
OUT_FEATURES = 1
LANE = 128
# Lanes per grid step. ~48 B/lane double-buffered -> ~6.3 MiB, safely under the
# scoped-VMEM defaults on v5e (16 MiB), v6e (32 MiB) and v7x (32 MiB).
MAX_TILE_B = 131072


def _round_up(n, m):
    return ((n + m - 1) // m) * m


def _pick_tile_b(B):
    """Lane-tile size: as large as allowed, but give the 'parallel' grid axis at
    least 2 steps when the batch allows it (v7x has 2 TensorCores per chip)."""
    tile = min(MAX_TILE_B, _round_up(B, LANE))
    if pl.cdiv(B, tile) < 2 and B > LANE:
        tile = _round_up(pl.cdiv(B, 2), LANE)
    return tile


def linear_kernel(w_ref, x_ref, o_ref):
    # w_ref: (IN_FEATURES,) f32 weight scalars in SMEM (broadcast from sreg).
    # x_ref: (IN_FEATURES, TILE_B) lane-dense batch tile in VMEM.
    # o_ref: (OUT_FEATURES, TILE_B) lane-dense output tile.
    # Unrolled 5-term FMA chain on the VALU: no product intermediate, no XLU
    # sublane reduce, no MXU. Static pl.ds slices are free.
    acc = x_ref[pl.ds(0, 1), :] * w_ref[0]
    for k in range(1, IN_FEATURES):
        acc = acc + x_ref[pl.ds(k, 1), :] * w_ref[k]
    o_ref[...] = acc.astype(o_ref.dtype)


def linear_forward_feature_major(x_fm, w_flat):
    """Preferred entry point (no transpose): x_fm [IN_FEATURES, B] feature-major,
    w_flat [IN_FEATURES] -> [OUT_FEATURES, B]."""
    _, B = x_fm.shape
    tile_b = _pick_tile_b(B)
    grid = (pl.cdiv(B, tile_b),)

    return pl.pallas_call(
        linear_kernel,
        out_shape=jax.ShapeDtypeStruct((OUT_FEATURES, B), x_fm.dtype),
        grid=grid,
        in_specs=[
            # Weight: tiny f32 scalar vector, resident in SMEM (no VMEM tile, no
            # per-step DMA, no lane broadcast op).
            pl.BlockSpec(memory_space=pltpu.MemorySpace.SMEM),
            # x tile: full feature extent (5 == full array dim, satisfies the
            # (8,128) rule), lane dim a multiple of 128. Trailing partial block
            # is handled by Pallas boundary masking -> no jnp.pad copy of x.
            pl.BlockSpec((IN_FEATURES, tile_b), lambda i: (0, i)),
        ],
        out_specs=pl.BlockSpec((OUT_FEATURES, tile_b), lambda i: (0, i)),
        compiler_params=pltpu.CompilerParams(
            # Batch tiles are independent -> shard across TCs on v7x,
            # harmless on v5e/v6e.
            dimension_semantics=("parallel",),
        ),
        cost_estimate=pl.CostEstimate(
            flops=2 * B * IN_FEATURES * OUT_FEATURES,
            transcendentals=0,
            bytes_accessed=4 * (B * IN_FEATURES + IN_FEATURES + B * OUT_FEATURES),
        ),
    )(w_flat, x_fm)


def linear_forward(x, w):
    """PyTorch-layout compatibility shim.
    x: [B, IN_FEATURES], w: [OUT_FEATURES, IN_FEATURES] -> [B, OUT_FEATURES],
    matching nn.Linear(5, 1, bias=False)."""
    # TODO(synk): this transpose is a full HBM read+write of x (~equal to the
    # kernel's own traffic). The real fix is upstream: have the producer emit
    # feature-major [IN_FEATURES, B] and call linear_forward_feature_major.
    x_fm = jnp.transpose(x)                                   # (IN_FEATURES, B)
    w_flat = jnp.reshape(w, (IN_FEATURES,)).astype(x.dtype)   # (IN_FEATURES,)
    out_fm = linear_forward_feature_major(x_fm, w_flat)       # (OUT_FEATURES, B)
    return jnp.transpose(out_fm)                              # (B, OUT_FEATURES)


if __name__ == "__main__":
    # Deterministic parameter init: weight = ones, matching torch.nn.init.ones_.
    # PyTorch Linear weight layout is [out_features, in_features].
    w = jnp.ones((OUT_FEATURES, IN_FEATURES), dtype=jnp.float32)

    key = jax.random.PRNGKey(0)

    # Small primary shape consistent with the module's forward.
    batch = 8
    x = jax.random.normal(key, (batch, IN_FEATURES), dtype=jnp.float32)
    y = jax.block_until_ready(linear_forward(x, w))
    ref = jnp.sum(x, axis=-1, keepdims=True)   # ones weight, no bias -> row-sum
    assert y.shape == (batch, OUT_FEATURES), y.shape
    assert jnp.allclose(y, ref, atol=1e-5), (y, ref)

    # Secondary check: exercises the 2-step grid (v7x split) and the masked
    # trailing partial block (B not a multiple of the lane tile).
    batch2 = 389
    x2 = jax.random.normal(jax.random.PRNGKey(1), (batch2, IN_FEATURES),
                           dtype=jnp.float32)
    y2 = jax.block_until_ready(linear_forward(x2, w))
    ref2 = jnp.sum(x2, axis=-1, keepdims=True)
    assert y2.shape == (batch2, OUT_FEATURES), y2.shape
    assert jnp.allclose(y2, ref2, atol=1e-5), (y2, ref2)

    print("KERNEL_OK")
</pallas_src>

<mosaic_0001>
module attributes {stable_mosaic.version = 11 : i64} {
  func.func @linear_kernel(%arg0: i32, %arg1: memref<5xf32, #tpu.memory_space<smem>>, %arg2: memref<5x128xf32, #tpu.memory_space<vmem>>, %arg3: memref<1x128xf32, #tpu.memory_space<vmem>>) attributes {dimension_semantics = [#tpu.dimension_semantics<parallel>], iteration_bounds = array<i64: 1>, scalar_prefetch = 0 : i64, scratch_operands = 0 : i64, tpu.core_type = #tpu.core_type<tc>, window_params = [{transform_indices = @transform_0, window_bounds = array<i64: 5>}, {transform_indices = @transform_1, window_bounds = array<i64: 5, 128>}, {transform_indices = @transform_2, window_bounds = array<i64: 1, 128>}]} {
    %c0 = arith.constant 0 : index
    %c0_0 = arith.constant 0 : index
    %0 = vector.load %arg2[%c0, %c0_0] : memref<5x128xf32, #tpu.memory_space<vmem>>, vector<1x128xf32>
    %c0_1 = arith.constant 0 : index
    %1 = memref.load %arg1[%c0_1] : memref<5xf32, #tpu.memory_space<smem>>
    %2 = vector.broadcast %1 : f32 to vector<1x128xf32>
    %3 = arith.mulf %0, %2 : vector<1x128xf32>
    %c1 = arith.constant 1 : index
    %c0_2 = arith.constant 0 : index
    %4 = vector.load %arg2[%c1, %c0_2] : memref<5x128xf32, #tpu.memory_space<vmem>>, vector<1x128xf32>
    %c1_3 = arith.constant 1 : index
    %5 = memref.load %arg1[%c1_3] : memref<5xf32, #tpu.memory_space<smem>>
    %6 = vector.broadcast %5 : f32 to vector<1x128xf32>
    %7 = arith.mulf %4, %6 : vector<1x128xf32>
    %8 = arith.addf %3, %7 : vector<1x128xf32>
    %c2 = arith.constant 2 : index
    %c0_4 = arith.constant 0 : index
    %9 = vector.load %arg2[%c2, %c0_4] : memref<5x128xf32, #tpu.memory_space<vmem>>, vector<1x128xf32>
    %c2_5 = arith.constant 2 : index
    %10 = memref.load %arg1[%c2_5] : memref<5xf32, #tpu.memory_space<smem>>
    %11 = vector.broadcast %10 : f32 to vector<1x128xf32>
    %12 = arith.mulf %9, %11 : vector<1x128xf32>
    %13 = arith.addf %8, %12 : vector<1x128xf32>
    %c3 = arith.constant 3 : index
    %c0_6 = arith.constant 0 : index
    %14 = vector.load %arg2[%c3, %c0_6] : memref<5x128xf32, #tpu.memory_space<vmem>>, vector<1x128xf32>
    %c3_7 = arith.constant 3 : index
    %15 = memref.load %arg1[%c3_7] : memref<5xf32, #tpu.memory_space<smem>>
    %16 = vector.broadcast %15 : f32 to vector<1x128xf32>
    %17 = arith.mulf %14, %16 : vector<1x128xf32>
    %18 = arith.addf %13, %17 : vector<1x128xf32>
    %c4 = arith.constant 4 : index
    %c0_8 = arith.constant 0 : index
    %19 = vector.load %arg2[%c4, %c0_8] : memref<5x128xf32, #tpu.memory_space<vmem>>, vector<1x128xf32>
    %c4_9 = arith.constant 4 : index
    %20 = memref.load %arg1[%c4_9] : memref<5xf32, #tpu.memory_space<smem>>
    %21 = vector.broadcast %20 : f32 to vector<1x128xf32>
    %22 = arith.mulf %19, %21 : vector<1x128xf32>
    %23 = arith.addf %18, %22 : vector<1x128xf32>
    %c0_10 = arith.constant 0 : index
    %c0_11 = arith.constant 0 : index
    %24 = vector.load %arg3[%c0_10, %c0_11] : memref<1x128xf32, #tpu.memory_space<vmem>>, vector<1x128xf32>
    tpu.vector_store %arg3[%c0_10, %c0_11], %23 {strides = array<i32>} : memref<1x128xf32, #tpu.memory_space<vmem>>, vector<1x128xf32>,
    return
  }
  func.func @transform_0(%arg0: i32) -> i32 {
    %c0_i32 = arith.constant 0 : i32
    %c0_i32_0 = arith.constant 0 : i32
    return %c0_i32 : i32
  }
  func.func @transform_1(%arg0: i32) -> (i32, i32) {
    %c0_i32 = arith.constant 0 : i32
    %c0_i32_0 = arith.constant 0 : i32
    return %c0_i32, %arg0 : i32, i32
  }
  func.func @transform_2(%arg0: i32) -> (i32, i32) {
    %c0_i32 = arith.constant 0 : i32
    %c0_i32_0 = arith.constant 0 : i32
    return %c0_i32, %arg0 : i32, i32
  }
}

</mosaic_0001>

<bundles_post_ra>
// kernel: tpu_custom_call.1
= control target key start
LH: loop header
LB: loop body
LE: loop exit
PB: predicated region body
PF: predicated region fallthrough
CT: control target
= control target key end

     0   :  { %7 = vsyncpa [#allocation5], 0  ;;  %s197_s0 = inlined_call_operand.hbm [shape: f32[5], index: 0, kind: input, shape index: {}]   ;;  %s198_s1 = inlined_call_operand.hbm [shape: f32[5,8], index: 1, kind: input, shape index: {}]   ;;  %s199_s2 = inlined_call_operand.hbm [shape: f32[1,8], index: 2, kind: output, shape index: {}]  }
   0x1   :  { %8 = vsyncpa [#allocation3], 0 }
   0x2   :  { %9 = vsyncpa [#allocation4], 0  ;;  %s83_s11 = scalar_lea.hbm %s197_s0, 16 }
   0x3   :  { %p84_p0 = scmp.ne.s32.totalorder %s197_s0, %s83_s11  ;;  %p87_p1 = scmp.lt.u32.totalorder %s83_s11, %s197_s0 }
   0x5   :  { %p89_p2 = pnand %p87_p1, %p84_p0 }
   0x7   :  { %92 = shalt.err (!%p89_p2)
}
   0x8   :  { %s143_s16 = smov [#allocation2]   ;;  %s144_s19 = smov [#allocation6]  }
   0x9   :  { %17 = dma.hbm_to_smem %s197_s0, 16, %s143_s16, [#allocation5]  }
   0xa   :  { %s24_s20 = sshll.u32 %s144_s19, 4  ;;  %s93_s23 = scalar_lea.hbm %s198_s1, 128  ;;  %s25_s20 = int_to_ptr.vmem [resolvable:$true] %s24_s20 }
   0xb   :  { %p94_p3 = scmp.ne.s32.totalorder %s198_s1, %s93_s23  ;;  %p97_p4 = scmp.lt.u32.totalorder %s93_s23, %s198_s1 }
   0xd   :  { %p99_p5 = pnand %p97_p4, %p94_p3 }
   0xf   :  { %102 = shalt.err (!%p99_p5)
}
  0x10   :  { %s103_s28 = scalar_lea.vmem %s25_s20, 128  ;;  %p108_p7 = scmp.lt.s32.totalorder %s25_s20, %s25_s20 }
  0x11   :  { %p104_p6 = scmp.ne.s32.totalorder %s25_s20, %s103_s28  ;;  %p109_p8 = scmp.lt.s32.totalorder %s103_s28, %s103_s28 }
  0x13   :  { %p110_p9 = por %p109_p8, %p108_p7 }
  0x15   :  { %p111_p10 = pnand %p110_p9, %p104_p6 }
  0x17   :  { %114 = shalt.err (!%p111_p10)
}
  0x18   :  { %27 = dma.hbm_to_vmem [thread:$0]  %s198_s1, 128, %s25_s20, [#allocation3]  }
  0x19   :  { %137 = dma.done.wait [#allocation5], 16  }
  0x1a   :  { %138 = vsyncadd [#allocation5], 4294967280 }
  0x1b   :  { %139 = dma.done.wait [#allocation3], 128  }
  0x1c   :  { %140 = vsyncadd [#allocation3], 4294967168 }
  0x1d   :  { %34 = sfence }
  0x1e   :  { %s36_s30 = sld [smem:[#allocation2]]  ;;  %s76_s3 = sld [smem:[#allocation2 + $0x1]]  ;;  %v35_v0 = vld [vmem:[#allocation6] sm:$0x1]  ;;  %v39_v1 = vld [vmem:[#allocation6 + $0x1] sm:$0x1] }
  0x1f   :  { %s77_s4 = sld [smem:[#allocation2 + $0x2]]  ;;  %s78_s5 = sld [smem:[#allocation2 + $0x3]]  ;;  %v44_v2 = vld [vmem:[#allocation6 + $0x2] sm:$0x1]  ;;  %v49_v7 = vld [vmem:[#allocation6 + $0x3] sm:$0x1] }
  0x20   :  { %s79_s6 = sld [smem:[#allocation2 + $0x4]]  ;;  %v54_v11 = vld [vmem:[#allocation6 + $0x4] sm:$0x1]  ;;  %s145_s1 = smov [#allocation7]  }
  0x21   :  { %s66_s7 = sshll.u32 %s145_s1, 4  ;;  %s67_s7 = int_to_ptr.vmem [resolvable:$true] %s66_s7 }
  0x22   :  { %s115_s8 = scalar_lea.vmem %s67_s7, 16  ;;  %s119_s9 = scalar_lea.vmem %s67_s7, 32 }
  0x23   :  { %p116_p11 = scmp.ne.s32.totalorder %s67_s7, %s115_s8  ;;  %p120_p12 = scmp.lt.s32.totalorder %s67_s7, %s67_s7 }
  0x24   :  { %v37_v3 = vstv %s36_s30  ;;  %v41_v5 = vstv %s76_s3  ;;  %p121_p13 = scmp.lt.s32.totalorder %s119_s9, %s115_s8 }
  0x25   :  { %v38_v4 = vmul.f32 %v37_v3, %v35_v0  ;;  %v46_v6 = vstv %s77_s4  ;;  %v42_v8 = vmul.f32 %v41_v5, %v39_v1  ;;  %v51_v10 = vstv %s78_s5 }
  0x26   :  { %v47_v9 = vmul.f32 %v46_v6, %v44_v2  ;;  %v56_v12 = vstv %s79_s6  ;;  %v52_v14 = vmul.f32 %v51_v10, %v49_v7  ;;  %p122_p0 = por %p121_p13, %p120_p12 }
  0x27   :  { %v43_v13 = vadd.f32 %v42_v8, %v38_v4  ;;  %v57_v16 = vmul.f32 %v56_v12, %v54_v11 }
  0x28   :  { %p123_p1 = pnand %p122_p0, %p116_p11 }
  0x29   :  { %v48_v15 = vadd.f32 %v47_v9, %v43_v13 }
  0x2b   :  { %v53_v17 = vadd.f32 %v52_v14, %v48_v15 }
  0x2d   :  { %v58_v18 = vadd.f32 %v57_v16, %v53_v17 }
  0x2f   :  { %59 = vst [vmem:[#allocation7] sm:$0x1] %v58_v18 }
  0x30   :  { %126 = shalt.err (!%p123_p1)
}
  0x31   :  { %s127_s12 = scalar_lea.hbm %s199_s2, 16 }
  0x32   :  { %p128_p2 = scmp.ne.s32.totalorder %s199_s2, %s127_s12  ;;  %p131_p3 = scmp.lt.u32.totalorder %s127_s12, %s199_s2 }
  0x34   :  { %p133_p4 = pnand %p131_p3, %p128_p2 }
  0x36   :  { %136 = shalt.err (!%p133_p4)
}
  0x37   :  { %69 = dma.vmem_to_hbm [thread:$0]  %s67_s7, 16, %s199_s2, [#allocation4]  }
  0x38   :  { %141 = dma.done.wait [#allocation4], 16  }
  0x39   :  { %142 = vsyncadd [#allocation4], 4294967280 }
  0x3a   :  { %73 = vsyncpa [#allocation3], 1 }
  0x3b   :  { %74 = vsyncpa [#allocation4], 1 }
  0x3c   :  { %75 = vsyncpa [#allocation5], 1 }

</bundles_post_ra>
